<compile_context>
chip_gen: v6e
topology: v6e:2x2x1
jax: 0.10.0
libtpu: 0.0.40
codegen_flags: <defaults>
</compile_context>

<pallas_src>
import jax
import jax.numpy as jnp
from jax.experimental import pallas as pl
from jax.experimental.pallas import tpu as pltpu


def _round_up(x, m):
    return (x + m - 1) // m * m


def _block_spec(shape, index_map, *, single_buffer=False):
    """BlockSpec helper; single-buffers constant-index (resident) blocks."""
    if single_buffer and hasattr(pl, "Buffered"):
        try:
            return pl.BlockSpec(shape, index_map, pipeline_mode=pl.Buffered(1))
        except TypeError:  # very old jax without pipeline_mode: plain spec
            pass
    return pl.BlockSpec(shape, index_map)


def _make_ffn_kernel(eps, inv_d, gemm_dt):
    def kernel(x_ref, w1_ref, b1_ref, w2_ref, pk_ref, o_ref, acc_ref):
        # x_ref : (TILE_N, Dp)   activation tile (pipelined over rows)
        # w1_ref: (Dp, Fc)       W1^T chunk
        # b1_ref: (1, Fc)  f32   b1 chunk
        # w2_ref: (Fc, Dp)       W2^T chunk
        # pk_ref: (3, Dp)  f32   rows: b2, gamma, beta
        # o_ref : (TILE_N, Dp)   output tile (written once, on last chunk)
        # acc_ref: (TILE_N, Dp) f32 scratch accumulator (persists across k)
        k = pl.program_id(1)

        @pl.when(k == 0)
        def _init():
            acc_ref[...] = jnp.zeros_like(acc_ref)

        # First pointwise conv (== linear) chunk + ReLU; f32 MXU accumulation.
        xg = x_ref[...].astype(gemm_dt)
        h = jnp.dot(xg, w1_ref[...], preferred_element_type=jnp.float32)
        h = jnp.maximum(h + b1_ref[...], 0.0)

        # Second pointwise conv chunk, accumulated in f32.
        acc_ref[...] += jnp.dot(h.astype(gemm_dt), w2_ref[...],
                                preferred_element_type=jnp.float32)

        @pl.when(k == pl.num_programs(1) - 1)
        def _finalize():
            pk = pk_ref[...]
            b2, gamma, beta = pk[0:1, :], pk[1:2, :], pk[2:3, :]
            # Residual (dropout p=0.0 -> identity); x cast inline (no early
            # f32 copy held live across the matmuls).
            z = acc_ref[...] + b2 + x_ref[...].astype(jnp.float32)
            # One-pass LayerNorm statistics over the TRUE model_dim (inv_d).
            # Padded columns of z are exactly zero, so the sums are unaffected.
            s1 = jnp.sum(z, axis=-1, keepdims=True)
            s2 = jnp.sum(z * z, axis=-1, keepdims=True)
            mean = s1 * inv_d
            var = jnp.maximum(s2 * inv_d - mean * mean, 0.0)
            inv = jax.lax.rsqrt(var + eps)
            o_ref[...] = ((z - mean) * inv * gamma + beta).astype(o_ref.dtype)

    return kernel


def positional_wise_feed_forward(x, w1, b1, w2, b2, gamma, beta, *,
                                 eps=1e-5, tile_n=512, max_f_chunk=2048,
                                 gemm_dtype=None, core_parallel=False):
    """x: (B, S, D); w1: (F, D); b1: (F,); w2: (D, F); b2, gamma, beta: (D,)."""
    B, S, D = x.shape
    F = w1.shape[0]
    N = B * S

    # GEMM operand dtype: bf16 when the caller passes f32 (f32 accumulation and
    # f32 residual/LayerNorm are kept). Pass gemm_dtype=jnp.float32 to disable.
    if gemm_dtype is None:
        gemm_dt = jnp.bfloat16 if x.dtype == jnp.float32 else x.dtype
    else:
        gemm_dt = jnp.dtype(gemm_dtype)

    x_isz = jnp.dtype(x.dtype).itemsize
    g_isz = jnp.dtype(gemm_dt).itemsize

    # ---- padding / tiling ---------------------------------------------------
    d_pad = max(128, _round_up(D, 128))                   # lane-dense model_dim
    f_chunk = min(_round_up(F, 256),                      # 256-aligned for MXU
                  max(256, _round_up(int(max_f_chunk), 256)))

    tile_n = max(8, _round_up(int(tile_n), 8))
    tn = _round_up(N, 8) if N <= tile_n else tile_n

    # ---- VMEM budget: shrink f_chunk / row tile until we fit ----------------
    try:
        phys_vmem = int(pltpu.get_tpu_info().vmem_capacity_bytes)
    except Exception:
        phys_vmem = 64 << 20                               # v7x per-TC floor
    vmem_cap = int(phys_vmem * 0.75)                       # ~48 MiB v7x, ~96 MiB v5e/v6e

    def vmem_need(tn_, fc_):
        nk = _round_up(F, fc_) // fc_
        wbuf = 1 if nk == 1 else 2                         # Buffered(1) residents
        need = 2 * tn_ * d_pad * x_isz                     # x (double-buffered)
        need += 2 * tn_ * d_pad * x_isz                    # out (double-buffered)
        need += wbuf * d_pad * fc_ * g_isz                 # W1^T chunk(s)
        need += wbuf * fc_ * d_pad * g_isz                 # W2^T chunk(s)
        need += wbuf * 8 * fc_ * 4                         # b1 (sublane-padded)
        need += 8 * d_pad * 4                              # packed b2/gamma/beta
        need += tn_ * d_pad * 4                            # f32 accumulator
        need += tn_ * fc_ * (4 + g_isz)                    # h (f32) + GEMM cast
        return need

    while vmem_need(tn, f_chunk) > vmem_cap:
        if f_chunk > 256:
            f_chunk = max(256, _round_up(f_chunk // 2, 256))
        elif tn > 256:
            tn = max(256, _round_up(tn // 2, 8))
        else:
            break

    f_pad = _round_up(F, f_chunk)
    k_tiles = f_pad // f_chunk
    n_pad = _round_up(N, tn)
    n_tiles = n_pad // tn

    need = vmem_need(tn, f_chunk)
    vmem_limit = int(min(vmem_cap, max(32 << 20, int(need * 1.2) + (2 << 20))))

    # ---- one-time data prep in the wrapper (transpose / cast / zero-pad) ----
    x2d = jnp.pad(x.reshape(N, D), ((0, n_pad - N), (0, d_pad - D)))
    w1_t = jnp.pad(jnp.asarray(w1).astype(gemm_dt).T,
                   ((0, d_pad - D), (0, f_pad - F)))       # (Dp, Fp)
    w2_t = jnp.pad(jnp.asarray(w2).astype(gemm_dt).T,
                   ((0, f_pad - F), (0, d_pad - D)))       # (Fp, Dp)
    b1_r = jnp.pad(jnp.asarray(b1).astype(jnp.float32).reshape(1, F),
                   ((0, 0), (0, f_pad - F)))               # (1, Fp)
    # b2 / gamma / beta packed into one small f32 input (one DMA, one buffer).
    # TODO(synk): b1 could additionally be folded into W1^T as an augmented row.
    pk = jnp.pad(jnp.stack([jnp.asarray(b2), jnp.asarray(gamma),
                            jnp.asarray(beta)]).astype(jnp.float32),
                 ((0, 0), (0, d_pad - D)))                 # (3, Dp)

    resident = (k_tiles == 1)
    in_specs = [
        _block_spec((tn, d_pad), lambda i, k: (i, 0)),                   # x tile
        _block_spec((d_pad, f_chunk), lambda i, k: (0, k),
                    single_buffer=resident),                             # W1^T
        _block_spec((1, f_chunk), lambda i, k: (0, k),
                    single_buffer=resident),                             # b1
        _block_spec((f_chunk, d_pad), lambda i, k: (k, 0),
                    single_buffer=resident),                             # W2^T
        _block_spec((3, d_pad), lambda i, k: (0, 0), single_buffer=True),  # b2/g/b
    ]
    out_spec = pl.BlockSpec((tn, d_pad), lambda i, k: (i, 0))

    # Row axis: "parallel"; CORE_PARALLEL shards row tiles over both v7x TCs.
    if core_parallel and hasattr(pltpu, "CORE_PARALLEL"):
        row_sem = pltpu.CORE_PARALLEL
    else:
        row_sem = "parallel"

    cost = pl.CostEstimate(
        flops=int(4 * n_pad * d_pad * f_pad + 10 * N * D),
        transcendentals=int(n_pad),
        bytes_accessed=int(2 * n_pad * d_pad * x_isz
                           + 2 * d_pad * f_pad * g_isz
                           + 4 * (f_pad + 3 * d_pad)),
    )

    out2d = pl.pallas_call(
        _make_ffn_kernel(float(eps), 1.0 / D, gemm_dt),
        out_shape=jax.ShapeDtypeStruct((n_pad, d_pad), x.dtype),
        grid_spec=pltpu.PrefetchScalarGridSpec(
            num_scalar_prefetch=0,
            grid=(n_tiles, k_tiles),
            in_specs=in_specs,
            out_specs=out_spec,
            scratch_shapes=[pltpu.VMEM((tn, d_pad), jnp.float32)],
        ),
        compiler_params=pltpu.CompilerParams(
            dimension_semantics=(row_sem, "arbitrary"),
            vmem_limit_bytes=vmem_limit),
        cost_estimate=cost,
    )(x2d, w1_t, b1_r, w2_t, pk)

    return out2d[:N, :D].reshape(B, S, D)


def _reference(x, w1, b1, w2, b2, gamma, beta, eps=1e-5):
    xf = x.astype(jnp.float32)
    h = jnp.maximum(xf @ w1.T.astype(jnp.float32) + b1, 0.0)
    y = h @ w2.T.astype(jnp.float32) + b2
    z = xf + y
    mean = z.mean(-1, keepdims=True)
    var = ((z - mean) ** 2).mean(-1, keepdims=True)
    return (z - mean) / jnp.sqrt(var + eps) * gamma + beta


if __name__ == "__main__":
    # Small shapes consistent with the module: (batch, seq, model_dim), ffn_dim.
    batch, seq, model_dim, ffn_dim = 2, 8, 32, 64

    key = jax.random.PRNGKey(0)
    kx, kw1, kb1, kw2, kb2, kg, kb = jax.random.split(key, 7)

    x = jax.random.normal(kx, (batch, seq, model_dim), jnp.float32)
    w1 = jax.random.normal(kw1, (ffn_dim, model_dim), jnp.float32) * 0.1
    b1 = jax.random.normal(kb1, (ffn_dim,), jnp.float32) * 0.1
    w2 = jax.random.normal(kw2, (model_dim, ffn_dim), jnp.float32) * 0.1
    b2 = jax.random.normal(kb2, (model_dim,), jnp.float32) * 0.1
    gamma = 1.0 + 0.1 * jax.random.normal(kg, (model_dim,), jnp.float32)
    beta = 0.1 * jax.random.normal(kb, (model_dim,), jnp.float32)

    ref = _reference(x, w1, b1, w2, b2, gamma, beta)

    # Strict check: f32 GEMM operands (bit-tight vs. the f32 reference).
    out_f32 = positional_wise_feed_forward(x, w1, b1, w2, b2, gamma, beta,
                                           gemm_dtype=jnp.float32)
    jax.block_until_ready(out_f32)
    assert out_f32.shape == (batch, seq, model_dim)
    err32 = float(jnp.max(jnp.abs(out_f32 - ref)))
    assert jnp.allclose(out_f32, ref, atol=1e-4, rtol=1e-4), err32

    # Default path: bf16 GEMM operands (f32 accumulation + f32 LayerNorm).
    out_bf = positional_wise_feed_forward(x, w1, b1, w2, b2, gamma, beta)
    jax.block_until_ready(out_bf)
    assert out_bf.shape == (batch, seq, model_dim)
    err_bf = float(jnp.max(jnp.abs(out_bf - ref)))
    assert jnp.allclose(out_bf, ref, atol=5e-2, rtol=5e-2), err_bf

    print("KERNEL_OK")
</pallas_src>

<mosaic_0001>
module attributes {stable_mosaic.version = 11 : i64} {
  func.func @kernel(%arg0: i32, %arg1: i32, %arg2: memref<16x128xf32, #tpu.memory_space<vmem>>, %arg3: memref<128x256xf32, #tpu.memory_space<vmem>>, %arg4: memref<1x256xf32, #tpu.memory_space<vmem>>, %arg5: memref<256x128xf32, #tpu.memory_space<vmem>>, %arg6: memref<3x128xf32, #tpu.memory_space<vmem>>, %arg7: memref<16x128xf32, #tpu.memory_space<vmem>>, %arg8: memref<16x128xf32, #tpu.memory_space<vmem>>) attributes {dimension_semantics = [#tpu.dimension_semantics<parallel>, #tpu.dimension_semantics<arbitrary>], iteration_bounds = array<i64: 1, 1>, scalar_prefetch = 0 : i64, scratch_operands = 1 : i64, tpu.core_type = #tpu.core_type<tc>, window_params = [{transform_indices = @transform_0, window_bounds = array<i64: 16, 128>}, {pipeline_mode = #tpu.pipeline_mode<synchronous>, transform_indices = @transform_1, window_bounds = array<i64: 128, 256>}, {pipeline_mode = #tpu.pipeline_mode<synchronous>, transform_indices = @transform_2, window_bounds = array<i64: 1, 256>}, {pipeline_mode = #tpu.pipeline_mode<synchronous>, transform_indices = @transform_3, window_bounds = array<i64: 256, 128>}, {pipeline_mode = #tpu.pipeline_mode<synchronous>, transform_indices = @transform_4, window_bounds = array<i64: 3, 128>}, {transform_indices = @transform_5, window_bounds = array<i64: 16, 128>}]} {
    %c0_i32 = arith.constant 0 : i32
    %0 = arith.cmpi eq, %arg1, %c0_i32 : i32
    %1 = arith.extui %0 : i1 to i32
    %c0_i32_0 = arith.constant 0 : i32
    %2 = arith.cmpi ne, %1, %c0_i32_0 : i32
    scf.if %2 {
      %cst_16 = arith.constant 0.000000e+00 : f32
      %19 = vector.broadcast %cst_16 : f32 to vector<16x128xf32>
      %c0_17 = arith.constant 0 : index
      %c0_18 = arith.constant 0 : index
      %20 = vector.load %arg8[%c0_17, %c0_18] : memref<16x128xf32, #tpu.memory_space<vmem>>, vector<16x128xf32>
      tpu.vector_store %arg8[%c0_17, %c0_18], %19 {strides = array<i32>} : memref<16x128xf32, #tpu.memory_space<vmem>>, vector<16x128xf32>,
    } else {
    }
    %c0 = arith.constant 0 : index
    %c0_1 = arith.constant 0 : index
    %3 = vector.load %arg2[%c0, %c0_1] : memref<16x128xf32, #tpu.memory_space<vmem>>, vector<16x128xf32>
    %c0_2 = arith.constant 0 : index
    %c0_3 = arith.constant 0 : index
    %4 = vector.load %arg3[%c0_2, %c0_3] : memref<128x256xf32, #tpu.memory_space<vmem>>, vector<128x256xf32>
    %cst = arith.constant dense<0.000000e+00> : vector<16x256xf32>
    %5 = tpu.matmul %3, %4, %cst {dimension_numbers = #tpu.dot_dimension_numbers<[1], [0], [0], [1], [0, 0, 1, 1], [], []>} : vector<16x128xf32>, vector<128x256xf32>, vector<16x256xf32> -> vector<16x256xf32>
    %c0_4 = arith.constant 0 : index
    %c0_5 = arith.constant 0 : index
    %6 = vector.load %arg4[%c0_4, %c0_5] : memref<1x256xf32, #tpu.memory_space<vmem>>, vector<1x256xf32>
    %7 = vector.broadcast %6 : vector<1x256xf32> to vector<16x256xf32>
    %8 = arith.addf %5, %7 : vector<16x256xf32>
    %cst_6 = arith.constant 0.000000e+00 : f32
    %9 = vector.broadcast %cst_6 : f32 to vector<16x256xf32>
    %10 = arith.maximumf %8, %9 : vector<16x256xf32>
    %c0_7 = arith.constant 0 : index
    %c0_8 = arith.constant 0 : index
    %11 = vector.load %arg8[%c0_7, %c0_8] : memref<16x128xf32, #tpu.memory_space<vmem>>, vector<16x128xf32>
    %c0_9 = arith.constant 0 : index
    %c0_10 = arith.constant 0 : index
    %12 = vector.load %arg5[%c0_9, %c0_10] : memref<256x128xf32, #tpu.memory_space<vmem>>, vector<256x128xf32>
    %cst_11 = arith.constant dense<0.000000e+00> : vector<16x128xf32>
    %13 = tpu.matmul %10, %12, %cst_11 {dimension_numbers = #tpu.dot_dimension_numbers<[1], [0], [0], [1], [0, 0, 1, 1], [], []>} : vector<16x256xf32>, vector<256x128xf32>, vector<16x128xf32> -> vector<16x128xf32>
    %14 = arith.addf %11, %13 : vector<16x128xf32>
    %c0_12 = arith.constant 0 : index
    %c0_13 = arith.constant 0 : index
    %15 = vector.load %arg8[%c0_12, %c0_13] : memref<16x128xf32, #tpu.memory_space<vmem>>, vector<16x128xf32>
    tpu.vector_store %arg8[%c0_12, %c0_13], %14 {strides = array<i32>} : memref<16x128xf32, #tpu.memory_space<vmem>>, vector<16x128xf32>,
    %c0_i32_14 = arith.constant 0 : i32
    %16 = arith.cmpi eq, %arg1, %c0_i32_14 : i32
    %17 = arith.extui %16 : i1 to i32
    %c0_i32_15 = arith.constant 0 : i32
    %18 = arith.cmpi ne, %17, %c0_i32_15 : i32
    scf.if %18 {
      %c0_16 = arith.constant 0 : index
      %c0_17 = arith.constant 0 : index
      %19 = vector.load %arg6[%c0_16, %c0_17] : memref<3x128xf32, #tpu.memory_space<vmem>>, vector<3x128xf32>
      %20 = vector.extract_strided_slice %19 {offsets = [0, 0], sizes = [1, 128], strides = [1, 1]} : vector<3x128xf32> to vector<1x128xf32>
      %21 = vector.extract_strided_slice %19 {offsets = [1, 0], sizes = [1, 128], strides = [1, 1]} : vector<3x128xf32> to vector<1x128xf32>
      %22 = vector.extract_strided_slice %19 {offsets = [2, 0], sizes = [1, 128], strides = [1, 1]} : vector<3x128xf32> to vector<1x128xf32>
      %c0_18 = arith.constant 0 : index
      %c0_19 = arith.constant 0 : index
      %23 = vector.load %arg8[%c0_18, %c0_19] : memref<16x128xf32, #tpu.memory_space<vmem>>, vector<16x128xf32>
      %24 = vector.broadcast %20 : vector<1x128xf32> to vector<16x128xf32>
      %25 = arith.addf %23, %24 : vector<16x128xf32>
      %c0_20 = arith.constant 0 : index
      %c0_21 = arith.constant 0 : index
      %26 = vector.load %arg2[%c0_20, %c0_21] : memref<16x128xf32, #tpu.memory_space<vmem>>, vector<16x128xf32>
      %27 = arith.addf %25, %26 : vector<16x128xf32>
      %cst_22 = arith.constant dense<0.000000e+00> : vector<16xf32>
      %28 = vector.multi_reduction <add>, %27, %cst_22 [1] : vector<16x128xf32> to vector<16xf32>
      %29 = vector.shape_cast %28 : vector<16xf32> to vector<16x1xf32>
      %30 = arith.mulf %27, %27 : vector<16x128xf32>
      %cst_23 = arith.constant dense<0.000000e+00> : vector<16xf32>
      %31 = vector.multi_reduction <add>, %30, %cst_23 [1] : vector<16x128xf32> to vector<16xf32>
      %32 = vector.shape_cast %31 : vector<16xf32> to vector<16x1xf32>
      %cst_24 = arith.constant 3.125000e-02 : f32
      %33 = vector.broadcast %cst_24 : f32 to vector<16x1xf32>
      %34 = arith.mulf %29, %33 : vector<16x1xf32>
      %cst_25 = arith.constant 3.125000e-02 : f32
      %35 = vector.broadcast %cst_25 : f32 to vector<16x1xf32>
      %36 = arith.mulf %32, %35 : vector<16x1xf32>
      %37 = arith.mulf %34, %34 : vector<16x1xf32>
      %38 = arith.subf %36, %37 : vector<16x1xf32>
      %cst_26 = arith.constant 0.000000e+00 : f32
      %39 = vector.broadcast %cst_26 : f32 to vector<16x1xf32>
      %40 = arith.maximumf %38, %39 : vector<16x1xf32>
      %cst_27 = arith.constant 9.99999974E-6 : f32
      %41 = vector.broadcast %cst_27 : f32 to vector<16x1xf32>
      %42 = arith.addf %40, %41 : vector<16x1xf32>
      %43 = math.rsqrt %42 : vector<16x1xf32>
      %44 = vector.broadcast %34 : vector<16x1xf32> to vector<16x128xf32>
      %45 = arith.subf %27, %44 : vector<16x128xf32>
      %46 = vector.broadcast %43 : vector<16x1xf32> to vector<16x128xf32>
      %47 = arith.mulf %45, %46 : vector<16x128xf32>
      %48 = vector.broadcast %21 : vector<1x128xf32> to vector<16x128xf32>
      %49 = arith.mulf %47, %48 : vector<16x128xf32>
      %50 = vector.broadcast %22 : vector<1x128xf32> to vector<16x128xf32>
      %51 = arith.addf %49, %50 : vector<16x128xf32>
      %c0_28 = arith.constant 0 : index
      %c0_29 = arith.constant 0 : index
      %52 = vector.load %arg7[%c0_28, %c0_29] : memref<16x128xf32, #tpu.memory_space<vmem>>, vector<16x128xf32>
      tpu.vector_store %arg7[%c0_28, %c0_29], %51 {strides = array<i32>} : memref<16x128xf32, #tpu.memory_space<vmem>>, vector<16x128xf32>,
    } else {
    }
    return
  }
  func.func @transform_0(%arg0: i32, %arg1: i32) -> (i32, i32) {
    %c0_i32 = arith.constant 0 : i32
    %c0_i32_0 = arith.constant 0 : i32
    return %arg0, %c0_i32 : i32, i32
  }
  func.func @transform_1(%arg0: i32, %arg1: i32) -> (i32, i32) {
    %c0_i32 = arith.constant 0 : i32
    %c0_i32_0 = arith.constant 0 : i32
    return %c0_i32, %arg1 : i32, i32
  }
  func.func @transform_2(%arg0: i32, %arg1: i32) -> (i32, i32) {
    %c0_i32 = arith.constant 0 : i32
    %c0_i32_0 = arith.constant 0 : i32
    return %c0_i32, %arg1 : i32, i32
  }
  func.func @transform_3(%arg0: i32, %arg1: i32) -> (i32, i32) {
    %c0_i32 = arith.constant 0 : i32
    %c0_i32_0 = arith.constant 0 : i32
    return %arg1, %c0_i32 : i32, i32
  }
  func.func @transform_4(%arg0: i32, %arg1: i32) -> (i32, i32) {
    %c0_i32 = arith.constant 0 : i32
    %c0_i32_0 = arith.constant 0 : i32
    %c0_i32_1 = arith.constant 0 : i32
    return %c0_i32, %c0_i32_0 : i32, i32
  }
  func.func @transform_5(%arg0: i32, %arg1: i32) -> (i32, i32) {
    %c0_i32 = arith.constant 0 : i32
    %c0_i32_0 = arith.constant 0 : i32
    return %arg0, %c0_i32 : i32, i32
  }
}

</mosaic_0001>

<bundles_post_ra>
// kernel: tpu_custom_call.1
= control target key start
LH: loop header
LB: loop body
LE: loop exit
PB: predicated region body
PF: predicated region fallthrough
CT: control target
= control target key end

     0   :  { %10 = vsyncpa [#allocation4], 0  ;;  %s598_s0 = inlined_call_operand.hbm [shape: f32[16,128], index: 0, kind: input, shape index: {}]   ;;  %s599_s1 = inlined_call_operand.hbm [shape: f32[128,256], index: 1, kind: input, shape index: {}]   ;;  %s600_s2 = inlined_call_operand.vmem [shape: f32[1,256], index: 2, kind: input, shape index: {}]   ;;  %s601_s3 = inlined_call_operand.hbm [shape: f32[256,128], index: 3, kind: input, shape index: {}]   ;;  %s602_s4 = inlined_call_operand.vmem [shape: f32[3,128], index: 4, kind: input, shape index: {}]   ;;  %s603_s5 = inlined_call_operand.hbm [shape: f32[16,128], index: 5, kind: output, shape index: {}]  }
   0x1   :  { %11 = vsyncpa [#allocation7], 0 }
   0x2   :  { %12 = vsyncpa [#allocation5], 0  ;;  %s521_s18 = smov [#allocation6]  }
   0x3   :  { %s30_s19 = sshll.u32 %s521_s18, 4  ;;  %s31_s19 = int_to_ptr.vmem [resolvable:$true] %s30_s19 }
   0x4   :  { %s443_s20 = scalar_lea.vmem %s31_s19, 4096  ;;  %p448_p1 = scmp.lt.s32.totalorder %s31_s19, %s31_s19 }
   0x5   :  { %p444_p0 = scmp.ne.s32.totalorder %s31_s19, %s443_s20  ;;  %p449_p2 = scmp.lt.s32.totalorder %s443_s20, %s443_s20 }
   0x7   :  { %p450_p3 = por %p449_p2, %p448_p1 }
   0x9   :  { %p451_p4 = pnand %p450_p3, %p444_p0 }
   0xb   :  { %454 = shalt.err (!%p451_p4)
}
   0xc   :  { %s522_s21 = smov 256   ;;  %s523_s22 = smov 16  }
   0xd   :  { %36 = dma.hbm_to_vmem [thread:$0]  %s599_s1, 4096, %s31_s19, [#allocation7], %s522_s21, %s522_s21, %s523_s22  }
   0xe   :  { %s524_s25 = smov [#allocation3]  }
   0xf   :  { %s18_s26 = sshll.u32 %s524_s25, 4  ;;  %s19_s26 = int_to_ptr.vmem [resolvable:$true] %s18_s26 }
  0x10   :  { %s463_s27 = scalar_lea.vmem %s19_s26, 256  ;;  %p468_p6 = scmp.lt.s32.totalorder %s19_s26, %s19_s26 }
  0x11   :  { %p464_p5 = scmp.ne.s32.totalorder %s19_s26, %s463_s27  ;;  %p469_p7 = scmp.lt.s32.totalorder %s463_s27, %s463_s27 }
  0x13   :  { %p470_p8 = por %p469_p7, %p468_p6 }
  0x15   :  { %p471_p9 = pnand %p470_p8, %p464_p5 }
  0x17   :  { %474 = shalt.err (!%p471_p9)
}
  0x18   :  { %s525_s28 = smov 128   ;;  %s526_s29 = smov 8  }
  0x19   :  { %24 = dma.hbm_to_vmem [thread:$0]  %s598_s0, 256, %s19_s26, [#allocation4], %s525_s28, %s525_s28, %s526_s29  }
  0x1a   :  { %s527_s1 = smov [#allocation8]  }
  0x1b   :  { %s44_s7 = sshll.u32 %s527_s1, 4  ;;  %s45_s7 = int_to_ptr.vmem [resolvable:$true] %s44_s7 }
  0x1c   :  { %s483_s8 = scalar_lea.vmem %s45_s7, 4096  ;;  %p488_p11 = scmp.lt.s32.totalorder %s45_s7, %s45_s7 }
  0x1d   :  { %p484_p10 = scmp.ne.s32.totalorder %s45_s7, %s483_s8  ;;  %p489_p12 = scmp.lt.s32.totalorder %s483_s8, %s483_s8 }
  0x1f   :  { %p490_p13 = por %p489_p12, %p488_p11 }
  0x21   :  { %p491_p0 = pnand %p490_p13, %p484_p10 }
  0x23   :  { %494 = shalt.err (!%p491_p0)
}
  0x24   :  { %50 = dma.hbm_to_vmem [thread:$0]  %s601_s3, 4096, %s45_s7, [#allocation7], %s525_s28, %s525_s28, %s526_s29  }
  0x25   :  { %515 = dma.done.wait [#allocation4], 256  }
  0x26   :  { %516 = vsyncadd [#allocation4], 4294967040 }
  0x27   :  { %517 = dma.done.wait [#allocation7], 8192  }
  0x28   :  { %518 = vsyncadd [#allocation7], 4294959104  ;;  %v528_v0 = vmov 0.0   ;;  %v101_v1 = vld [vmem:[#allocation6 + $0xf8] sm:$0xff]  ;;  %v100_v2 = vld [vmem:[#allocation6 + $0xf0] sm:$0xff] }
  0x29   :  { %178 = vmatprep.mubr.f32.mxu0 %v528_v0  ;;  %v99_v3 = vld [vmem:[#allocation6 + $0xe8] sm:$0xff]  ;;  %114 = vmatprep.subr.mxu0 %v101_v1  ;;  %v98_v4 = vld [vmem:[#allocation6 + $0xe0] sm:$0xff]  ;;  %v97_v5 = vld [vmem:[#allocation6 + $0xd8] sm:$0xff] }
  0x2a   :  { %115 = vmatpush1.msra.mxu0 %v100_v2  ;;  %v96_v6 = vld [vmem:[#allocation6 + $0xd0] sm:$0xff]  ;;  %v95_v7 = vld [vmem:[#allocation6 + $0xc8] sm:$0xff]  ;;  %v94_v8 = vld [vmem:[#allocation6 + $0xc0] sm:$0xff] }
  0x2b   :  { %116 = vmatprep.subr.mxu0 %v99_v3  ;;  %v93_v9 = vld [vmem:[#allocation6 + $0xb8] sm:$0xff]  ;;  %v92_v10 = vld [vmem:[#allocation6 + $0xb0] sm:$0xff]  ;;  %v91_v11 = vld [vmem:[#allocation6 + $0xa8] sm:$0xff] }
  0x2c   :  { %117 = vmatpush1.msra.mxu0 %v98_v4  ;;  %v90_v12 = vld [vmem:[#allocation6 + $0xa0] sm:$0xff]  ;;  %v89_v13 = vld [vmem:[#allocation6 + $0x98] sm:$0xff]  ;;  %v88_v14 = vld [vmem:[#allocation6 + $0x90] sm:$0xff] }
  0x2d   :  { %118 = vmatprep.subr.mxu0 %v97_v5  ;;  %v228_v15 = vld [vmem:[#allocation8 + $0xf8] sm:$0xff]  ;;  %v87_v17 = vld [vmem:[#allocation6 + $0x88] sm:$0xff]  ;;  %v227_v18 = vld [vmem:[#allocation8 + $0xf0] sm:$0xff] }
  0x2e   :  { %119 = vmatpush1.msra.mxu0 %v96_v6  ;;  %v212_v16 = vld [vmem:[#allocation8 + $0x78] sm:$0xff]  ;;  %384 = vmatprep.subr.mxu1 %v228_v15  ;;  %v211_v19 = vld [vmem:[#allocation8 + $0x70] sm:$0xff]  ;;  %v86_v20 = vld [vmem:[#allocation6 + $0x80] sm:$0xff] }
  0x2f   :  { %120 = vmatprep.subr.mxu0 %v95_v7  ;;  %385 = vmatpush3.msra.mxu1 %v212_v16  ;;  %v226_v21 = vld [vmem:[#allocation8 + $0xe8] sm:$0xff]  ;;  %v85_v22 = vld [vmem:[#allocation6 + $0x78] sm:$0xff]  ;;  %v84_v24 = vld [vmem:[#allocation6 + $0x70] sm:$0xff] }
  0x30   :  { %121 = vmatpush1.msra.mxu0 %v94_v8  ;;  %386 = vmatprep.subr.mxu1 %v227_v18  ;;  %v210_v23 = vld [vmem:[#allocation8 + $0x68] sm:$0xff]  ;;  %v225_v25 = vld [vmem:[#allocation8 + $0xe0] sm:$0xff]  ;;  %v224_v29 = vld [vmem:[#allocation8 + $0xd8] sm:$0xff] }
  0x31   :  { %122 = vmatprep.subr.mxu0 %v93_v9  ;;  %387 = vmatpush3.msra.mxu1 %v211_v19  ;;  %v83_v26 = vld [vmem:[#allocation6 + $0x68] sm:$0xff]  ;;  %v209_v27 = vld [vmem:[#allocation8 + $0x60] sm:$0xff]  ;;  %v81_v30 = vld [vmem:[#allocation6 + $0x58] sm:$0xff] }
  0x32   :  { %123 = vmatpush1.msra.mxu0 %v92_v10  ;;  %388 = vmatprep.subr.mxu1 %v226_v21  ;;  %v82_v28 = vld [vmem:[#allocation6 + $0x60] sm:$0xff]  ;;  %v208_v31 = vld [vmem:[#allocation8 + $0x58] sm:$0xff]  ;;  %v80_v32 = vld [vmem:[#allocation6 + $0x50] sm:$0xff] }
  0x33   :  { %124 = vmatprep.subr.mxu0 %v91_v11  ;;  %389 = vmatpush3.msra.mxu1 %v210_v23  ;;  %v223_v33 = vld [vmem:[#allocation8 + $0xd0] sm:$0xff]  ;;  %v79_v34 = vld [vmem:[#allocation6 + $0x48] sm:$0xff]  ;;  %v78_v36 = vld [vmem:[#allocation6 + $0x40] sm:$0xff] }
  0x34   :  { %125 = vmatpush1.msra.mxu0 %v90_v12  ;;  %390 = vmatprep.subr.mxu1 %v225_v25  ;;  %v207_v35 = vld [vmem:[#allocation8 + $0x50] sm:$0xff]  ;;  %v222_v37 = vld [vmem:[#allocation8 + $0xc8] sm:$0xff]  ;;  %v77_v38 = vld [vmem:[#allocation6 + $0x38] sm:$0xff] }
  0x35   :  { %126 = vmatprep.subr.mxu0 %v89_v13  ;;  %391 = vmatpush3.msra.mxu1 %v209_v27  ;;  %v206_v39 = vld [vmem:[#allocation8 + $0x48] sm:$0xff]  ;;  %v76_v40 = vld [vmem:[#allocation6 + $0x30] sm:$0xff]  ;;  %v221_v41 = vld [vmem:[#allocation8 + $0xc0] sm:$0xff] }
  0x36   :  { %127 = vmatpush1.msra.mxu0 %v88_v14  ;;  %392 = vmatprep.subr.mxu1 %v224_v29  ;;  %v75_v42 = vld [vmem:[#allocation6 + $0x28] sm:$0xff]  ;;  %v205_v43 = vld [vmem:[#allocation8 + $0x40] sm:$0xff]  ;;  %v220_v45 = vld [vmem:[#allocation8 + $0xb8] sm:$0xff] }
  0x37   :  { %128 = vmatprep.subr.mxu0 %v87_v17  ;;  %393 = vmatpush3.msra.mxu1 %v208_v31  ;;  %v74_v44 = vld [vmem:[#allocation6 + $0x20] sm:$0xff]  ;;  %v73_v46 = vld [vmem:[#allocation6 + $0x18] sm:$0xff]  ;;  %v72_v48 = vld [vmem:[#allocation6 + $0x10] sm:$0xff] }
  0x38   :  { %129 = vmatpush1.msra.mxu0 %v86_v20  ;;  %394 = vmatprep.subr.mxu1 %v223_v33  ;;  %v204_v47 = vld [vmem:[#allocation8 + $0x38] sm:$0xff]  ;;  %v219_v49 = vld [vmem:[#allocation8 + $0xb0] sm:$0xff]  ;;  %v71_v50 = vld [vmem:[#allocation6 + $0x8] sm:$0xff] }
  0x39   :  { %130 = vmatprep.subr.mxu0 %v85_v22  ;;  %395 = vmatpush3.msra.mxu1 %v207_v35  ;;  %v203_v51 = vld [vmem:[#allocation8 + $0x30] sm:$0xff]  ;;  %v70_v52 = vld [vmem:[#allocation6] sm:$0xff]  ;;  %v218_v53 = vld [vmem:[#allocation8 + $0xa8] sm:$0xff] }
  0x3a   :  { %131 = vmatpush1.msra.mxu0 %v84_v24  ;;  %396 = vmatprep.subr.mxu1 %v222_v37  ;;  %v576_v54 = vld [vmem:[#allocation3] sm:$0xff]  ;;  %v202_v55 = vld [vmem:[#allocation8 + $0x28] sm:$0xff]  ;;  %v217_v56 = vld [vmem:[#allocation8 + $0xa0] sm:$0xff] }
  0x3b   :  { %132 = vmatprep.subr.mxu0 %v83_v26  ;;  %397 = vmatpush3.msra.mxu1 %v206_v39  ;;  %v201_v57 = vld [vmem:[#allocation8 + $0x20] sm:$0xff]  ;;  %v69_v58 = vld [vmem:[#allocation3 + $0x8] sm:$0xff]  ;;  %v215_v61 = vld [vmem:[#allocation8 + $0x90] sm:$0xff] }
  0x3c   :  { %133 = vmatpush1.msra.mxu0 %v82_v28  ;;  %398 = vmatprep.subr.mxu1 %v221_v41  ;;  %v216_v59 = vld [vmem:[#allocation8 + $0x98] sm:$0xff]  ;;  %v199_v62 = vld [vmem:[#allocation8 + $0x10] sm:$0xff]  ;;  %v214_v63 = vld [vmem:[#allocation8 + $0x88] sm:$0xff] }
  0x3d   :  { %134 = vmatprep.subr.mxu0 %v81_v30  ;;  %399 = vmatpush3.msra.mxu1 %v205_v43  ;;  %v200_v60 = vld [vmem:[#allocation8 + $0x18] sm:$0xff]  ;;  %v198_v1 = vld [vmem:[#allocation8 + $0x8] sm:$0xff]  ;;  %v213_v2 = vld [vmem:[#allocation8 + $0x80] sm:$0xff] }
  0x3e   :  { %135 = vmatpush1.msra.mxu0 %v80_v32  ;;  %400 = vmatprep.subr.mxu1 %v220_v45  ;;  %v197_v3 = vld [vmem:[#allocation8] sm:$0xff]  ;;  %v102_v6 = vld [vmem:[%s600_s2] sm:$0x3] }
  0x3f   :  { %136 = vmatprep.subr.mxu0 %v79_v34  ;;  %401 = vmatpush3.msra.mxu1 %v204_v47  ;;  %v311_v22 = vld [vmem:[%s602_s4] sm:$0x7]  ;;  %s529_s4 = smov [#allocation9]  }
  0x40   :  { %137 = vmatpush1.msra.mxu0 %v78_v36  ;;  %402 = vmatprep.subr.mxu1 %v219_v49  ;;  %s371_s12 = sshll.u32 %s529_s4, 4  ;;  %s372_s12 = int_to_ptr.vmem [resolvable:$true] %s371_s12 }
  0x41   :  { %138 = vmatprep.subr.mxu0 %v77_v38  ;;  %403 = vmatpush3.msra.mxu1 %v203_v51  ;;  %s495_s13 = scalar_lea.vmem %s372_s12, 256  ;;  %p500_p2 = scmp.lt.s32.totalorder %s372_s12, %s372_s12 }
  0x42   :  { %139 = vmatpush1.msra.mxu0 %v76_v40  ;;  %404 = vmatprep.subr.mxu1 %v218_v53  ;;  %p496_p1 = scmp.ne.s32.totalorder %s372_s12, %s495_s13  ;;  %p501_p3 = scmp.lt.s32.totalorder %s495_s13, %s495_s13 }
  0x43   :  { %140 = vmatprep.subr.mxu0 %v75_v42  ;;  %405 = vmatpush3.msra.mxu1 %v202_v55 }
  0x44   :  { %141 = vmatpush1.msra.mxu0 %v74_v44  ;;  %406 = vmatprep.subr.mxu1 %v217_v56  ;;  %p502_p4 = por %p501_p3, %p500_p2 }
  0x45   :  { %142 = vmatprep.subr.mxu0 %v73_v46  ;;  %407 = vmatpush3.msra.mxu1 %v201_v57 }
  0x46   :  { %143 = vmatpush1.msra.mxu0 %v72_v48  ;;  %408 = vmatprep.subr.mxu1 %v216_v59  ;;  %p503_p5 = pnand %p502_p4, %p496_p1 }
  0x47   :  { %144 = vmatprep.subr.mxu0 %v71_v50  ;;  %409 = vmatpush3.msra.mxu1 %v200_v60 }
  0x48   :  { %145 = vmatpush1.msra.mxu0 %v70_v52  ;;  %410 = vmatprep.subr.mxu1 %v215_v61 }
  0x49   :  { %179 = vmatmul.mubr.f32.vlgmr.msra.gmra.mxu0 %v576_v54  ;;  %411 = vmatpush3.msra.mxu1 %v199_v62 }
  0x4a   :  { %184 = vmatprep.mubr.f32.mxu0 %v528_v0  ;;  %412 = vmatprep.subr.mxu1 %v214_v63  ;;  %v104_v0 = vlaneseq }
  0x4b   :  { %413 = vmatpush3.msra.mxu1 %v198_v1 }
  0x4c   :  { %414 = vmatprep.subr.mxu1 %v213_v2  ;;  %v580_v4 = vshrl.u32 %v104_v0, 7 }
  0x4d   :  { %185 = vmatmul.mubr.f32.gmra.mxu0 %v69_v58  ;;  %415 = vmatpush3.msra.mxu1 %v197_v3 }
  0x4e   :  { %v106_v5 = vsub.s32 0, %v580_v4  ;;  %v110_v7 = vsub.s32 1, %v580_v4  ;;  %v360_v52 = vsub.s32 2, %v580_v4 }
  0x50   :  { %v107_v8 = vrot.slane %v102_v6, %v106_v5  ;;  %v111_v9 = vrot.slane %v102_v6, %v110_v7  ;;  %v317_v24 = vrot.slane %v311_v22, %v106_v5  ;;  %v355_v53 = vrot.slane %v311_v22, %v110_v7 }
  0x51   :  { %v361_v57 = vrot.slane %v311_v22, %v360_v52 }
 0x109   :  { %v180_v10 = vpop.f32.mrf.mxu0 }
 0x10a   :  { %v181_v11 = vadd.f32 %v180_v10, %v107_v8 }
 0x10b   :  { %v182_v12 = vpop.f32.mrf.mxu0 }
 0x10c   :  { %v183_v13 = vadd.f32 %v182_v12, %v111_v9  ;;  %v191_v16 = vmax.f32 %v181_v11, 0.0 }
 0x10d   :  { %v186_v14 = vpop.f32.mrf.mxu0 }
 0x10e   :  { %v192_v15 = vmax.f32 %v183_v13, 0.0  ;;  %v187_v17 = vadd.f32 %v186_v14, %v107_v8 }
 0x10f   :  { %v188_v18 = vpop.f32.mrf.mxu0 }
 0x110   :  { %v189_v19 = vadd.f32 %v188_v18, %v111_v9  ;;  %293 = vmatprep.mubr.f32.mxu1 %v192_v15  ;;  %v193_v21 = vmax.f32 %v187_v17, 0.0 }
 0x111   :  { %294 = vmatmul.mubr.f32.vlgmr.msra.gmra.mxu1 %v191_v16 }
 0x112   :  { %v194_v20 = vmax.f32 %v189_v19, 0.0 }
 0x114   :  { %298 = vmatprep.mubr.f32.mxu1 %v194_v20 }
 0x115   :  { %299 = vmatmul.mubr.f32.gmra.mxu1 %v193_v21 }
 0x1d1   :  { %v416_v23 = vpop.f32.mrf.mxu1 }
 0x1d3   :  { %v417_v25 = vpop.f32.mrf.mxu1 }
 0x1d4   :  { %v418_v26 = vadd.f32 %v417_v25, %v416_v23 }
 0x1d5   :  { %v419_v27 = vpop.f32.mrf.mxu1 }
 0x1d6   :  { %v318_v28 = vadd.f32 %v418_v26, %v317_v24 }
 0x1d7   :  { %v420_v29 = vpop.f32.mrf.mxu1 }
 0x1d8   :  { %v421_v30 = vadd.f32 %v420_v29, %v419_v27  ;;  %v322_v31 = vadd.f32 %v318_v28, %v576_v54 }
 0x1da   :  { %v319_v32 = vadd.f32 %v421_v30, %v317_v24  ;;  %324 = vadd.xlane.f32.xlu0 %v322_v31  ;;  %v328_v33 = vmul.f32 %v322_v31, %v322_v31 }
 0x1dc   :  { %330 = vadd.xlane.f32.xlu1 %v328_v33  ;;  %v323_v34 = vadd.f32 %v319_v32, %v69_v58 }
 0x1de   :  { %326 = vadd.xlane.f32.xlu0 %v323_v34  ;;  %v329_v35 = vmul.f32 %v323_v34, %v323_v34 }
 0x1e0   :  { %332 = vadd.xlane.f32.xlu1 %v329_v35 }
 0x263   :  { %v325_v36 = vpop.xlane.xlu0 %324 }
 0x264   :  { %v334_v37 = vmul.f32 0.03125, %v325_v36 }
 0x265   :  { %v331_v38 = vpop.xlane.xlu1 %330 }
 0x266   :  { %v338_v39 = vmul.f32 %v334_v37, %v334_v37  ;;  %v336_v40 = vmul.f32 0.03125, %v331_v38  ;;  %v348_v54 = vsub.f32 %v322_v31, %v334_v37 }
 0x267   :  { %v327_v41 = vpop.xlane.xlu0 %326 }
 0x268   :  { %v340_v42 = vsub.f32 %v336_v40, %v338_v39  ;;  %v335_v43 = vmul.f32 0.03125, %v327_v41 }
 0x269   :  { %v333_v44 = vpop.xlane.xlu1 %332 }
 0x26a   :  { %v342_v45 = vmax.f32 %v340_v42, 0.0  ;;  %v339_v46 = vmul.f32 %v335_v43, %v335_v43  ;;  %v337_v47 = vmul.f32 0.03125, %v333_v44  ;;  %v349_v58 = vsub.f32 %v323_v34, %v335_v43 }
 0x26c   :  { %v344_v48 = vadd.f32 1e-05, %v342_v45  ;;  %v341_v49 = vsub.f32 %v337_v47, %v339_v46 }
 0x26e   :  { %431 = vrsqrt.f32 %v344_v48  ;;  %v343_v50 = vmax.f32 %v341_v49, 0.0 }
 0x270   :  { %v345_v51 = vadd.f32 1e-05, %v343_v50 }
 0x272   :  { %433 = vrsqrt.f32 %v345_v51 }
 0x27b   :  { %v432_v55 = vpop.eup %431 }
 0x27c   :  { %v350_v56 = vmul.f32 %v432_v55, %v348_v54 }
 0x27e   :  { %v356_v59 = vmul.f32 %v355_v53, %v350_v56 }
 0x27f   :  { %v434_v60 = vpop.eup %433 }
 0x280   :  { %v351_v61 = vmul.f32 %v434_v60, %v349_v58  ;;  %v362_v62 = vadd.f32 %v361_v57, %v356_v59 }
 0x282   :  { %v357_v63 = vmul.f32 %v355_v53, %v351_v61  ;;  %364 = vst [vmem:[#allocation9] sm:$0xff] %v362_v62 }
 0x284   :  { %v363_v1 = vadd.f32 %v361_v57, %v357_v63 }
 0x286   :  { %365 = vst [vmem:[#allocation9 + $0x8] sm:$0xff] %v363_v1 }
 0x287   :  { %506 = shalt.err (!%p503_p5)
}
 0x288   :  { %377 = dma.vmem_to_hbm [thread:$0]  %s372_s12, 256, %s603_s5, [#allocation5], %s525_s28, %s525_s28, %s526_s29  }
 0x289   :  { %519 = dma.done.wait [#allocation5], 256  }
 0x28a   :  { %520 = vsyncadd [#allocation5], 4294967040 }
 0x28b   :  { %381 = vsyncpa [#allocation4], 1 }
 0x28c   :  { %382 = vsyncpa [#allocation7], 1 }
 0x28d   :  { %383 = vsyncpa [#allocation5], 1 }

</bundles_post_ra>
